<compile_context>
chip_gen: v7x
topology: tpu7x:2x2x1
jax: 0.10.0
libtpu: 0.0.40
codegen_flags: <defaults>
</compile_context>

<pallas_src>
import jax
import jax.numpy as jnp
import numpy as np
from jax.experimental import pallas as pl
from jax.experimental.pallas import tpu as pltpu


def pam_kernel(q_ref, k_ref, v_ref, x_ref, gamma_ref, o_ref, acc_ref):
    # q_ref   : (1, TQ, C8)  compute dtype  query projection tile (pixel-major)
    # k_ref   : (1, C8, TKV) compute dtype  key projection tile (channel-major)
    # v_ref   : (1, C, TKV)  compute dtype  value projection tile (channel-major)
    # x_ref   : (1, C, TQ)   f32            residual x tile (query side)
    # gamma   : (1, 1)       f32 (SMEM)
    # o_ref   : (1, C, TQ)   f32
    # acc_ref : (C, TQ)      f32 VMEM accumulator, lives across the key axis
    ki = pl.program_id(2)

    @pl.when(ki == 0)
    def _init():
        acc_ref[...] = jnp.zeros_like(acc_ref)

    # energy[m, n] = <q_m, k_n>  -- natural (M, K) x (K, N) MXU form:
    # query pixels on sublanes, key pixels on lanes.
    energy = jnp.dot(q_ref[0], k_ref[0],
                     preferred_element_type=jnp.float32)            # (TQ, TKV)
    attn = jnp.tanh(energy)                                         # f32 EUP

    # acc[c, m] += sum_n v[c, n] * attn[m, n]   (transposed-RHS contraction)
    acc_ref[...] += jax.lax.dot_general(
        v_ref[0], attn.astype(v_ref.dtype),
        dimension_numbers=(((1,), (1,)), ((), ())),
        preferred_element_type=jnp.float32)                         # (C, TQ)

    @pl.when(ki == pl.num_programs(2) - 1)
    def _finalize():
        # Residual epilogue in f32; output block is lane-dense along TQ.
        o_ref[0] = (gamma_ref[0, 0] * acc_ref[...] + x_ref[0]).astype(o_ref.dtype)


def _pick_tile(n, target):
    """Largest lane-aligned (multiple of 128) tile <= target that divides n,
    falling back to the full extent (always a legal BlockSpec dim)."""
    if n <= target:
        return n
    t = (target // 128) * 128
    while t >= 128:
        if n % t == 0:
            return t
        t -= 128
    return n


def pam_forward(x_nchw, params, *, tq=512, tkv=512, compute_dtype=jnp.bfloat16):
    B, C, H, W = x_nchw.shape
    N = H * W
    C8 = params["wq"].shape[0]
    cdt = compute_dtype

    # Channel-major layout: free reshape, no HBM transposes.
    x_bcn = x_nchw.reshape(B, C, N).astype(jnp.float32)
    x_c = x_bcn.astype(cdt)

    # 1x1-conv projections done once in the wrapper (f32 accumulation, stored
    # in the MXU compute dtype).  Query is pixel-major so the in-kernel energy
    # matmul is a natural (TQ, C8) x (C8, TKV) contraction; key/value stay
    # channel-major so the output contraction and writeback are lane-dense.
    wq, wk, wv = (params[k].astype(cdt) for k in ("wq", "wk", "wv"))
    q_bnc8 = (jnp.einsum("oc,bcn->bno", wq, x_c, preferred_element_type=jnp.float32)
              + params["bq"].reshape(1, 1, C8)).astype(cdt)
    k_bc8n = (jnp.einsum("oc,bcn->bon", wk, x_c, preferred_element_type=jnp.float32)
              + params["bk"][None]).astype(cdt)
    v_bcn = (jnp.einsum("oc,bcn->bon", wv, x_c, preferred_element_type=jnp.float32)
             + params["bv"][None]).astype(cdt)

    TQ = _pick_tile(N, tq)
    TKV = _pick_tile(N, tkv)
    grid = (B, N // TQ, N // TKV)

    out_bcn = pl.pallas_call(
        pam_kernel,
        out_shape=jax.ShapeDtypeStruct((B, C, N), jnp.float32),
        grid_spec=pltpu.PrefetchScalarGridSpec(
            num_scalar_prefetch=0,
            grid=grid,
            in_specs=[
                pl.BlockSpec((1, TQ, C8), lambda b, qi, ki: (b, qi, 0)),   # q tile
                pl.BlockSpec((1, C8, TKV), lambda b, qi, ki: (b, 0, ki)),  # k tile
                pl.BlockSpec((1, C, TKV), lambda b, qi, ki: (b, 0, ki)),   # v tile
                pl.BlockSpec((1, C, TQ), lambda b, qi, ki: (b, 0, qi)),    # x residual
                pl.BlockSpec(memory_space=pltpu.MemorySpace.SMEM),         # gamma
            ],
            out_specs=pl.BlockSpec((1, C, TQ), lambda b, qi, ki: (b, 0, qi)),
            scratch_shapes=[pltpu.VMEM((C, TQ), jnp.float32)],             # accumulator
        ),
        compiler_params=pltpu.CompilerParams(
            dimension_semantics=("parallel", "parallel", "arbitrary"),
            vmem_limit_bytes=48 * 1024 * 1024,
        ),
    )(
        q_bnc8, k_bc8n, v_bcn, x_bcn,
        params["gamma"].astype(jnp.float32),
    )

    return out_bcn.reshape(B, C, H, W)


def pam_ref(x, p):
    """Pure-JAX f32 reference mirroring the PyTorch forward exactly."""
    B, C, H, W = x.shape
    N = H * W
    xf = x.reshape(B, C, N).astype(jnp.float32)
    q = jnp.einsum("oc,bcn->bon", p["wq"], xf) + p["bq"][None]      # (B, C8, N)
    k = jnp.einsum("oc,bcn->bon", p["wk"], xf) + p["bk"][None]      # (B, C8, N)
    v = jnp.einsum("oc,bcn->bon", p["wv"], xf) + p["bv"][None]      # (B, C,  N)
    energy = jnp.einsum("bom,bon->bmn", q, k)                       # (B, N, N)
    attn = jnp.tanh(energy)
    out = jnp.einsum("bcn,bmn->bcm", v, attn).reshape(B, C, H, W)
    return p["gamma"].reshape(()) * out + x


def init_params(key, in_dim):
    """Deterministic init matching PAM_Module.__init__ shapes (Conv2d 1x1)."""
    c8 = max(in_dim // 8, 1)
    k = jax.random.split(key, 6)
    s = 1.0 / np.sqrt(in_dim)
    return {
        "wq": jax.random.uniform(k[0], (c8, in_dim), jnp.float32, -s, s),
        "bq": jax.random.uniform(k[1], (c8, 1), jnp.float32, -s, s),
        "wk": jax.random.uniform(k[2], (c8, in_dim), jnp.float32, -s, s),
        "bk": jax.random.uniform(k[3], (c8, 1), jnp.float32, -s, s),
        "wv": jax.random.uniform(k[4], (in_dim, in_dim), jnp.float32, -s, s),
        "bv": jax.random.uniform(k[5], (in_dim, 1), jnp.float32, -s, s),
        "gamma": jnp.zeros((1, 1), jnp.float32),   # nn.Parameter(torch.zeros(1))
    }


if __name__ == "__main__":
    B, C, H, W = 2, 32, 16, 16          # in_dim=32 -> C8 = 4, N = 256
    key = jax.random.PRNGKey(0)
    kx, kp = jax.random.split(key)
    x = jax.random.normal(kx, (B, C, H, W), jnp.float32)
    params = init_params(kp, C)

    # tq=tkv=128 -> grid (2, 2, 2): exercises query tiling, the key-axis
    # accumulation and the init/finalize pl.when paths even at this small size.
    def run(p, **kw):
        return jax.block_until_ready(pam_forward(x, p, tq=128, tkv=128, **kw))

    # 1) gamma == 0 (module init): output must equal the input exactly.
    out0 = run(params)
    assert np.allclose(np.asarray(out0), np.asarray(x), atol=1e-5, rtol=1e-5)

    # 2) Nonzero gamma exercises the full attention path.
    params_nz = dict(params, gamma=jnp.full((1, 1), 0.5, jnp.float32))
    ref = np.asarray(pam_ref(x, params_nz))
    scale = np.max(np.abs(ref)) + 1e-6

    # f32 compute path (structural check of the tiling / accumulation).
    out_f32 = run(params_nz, compute_dtype=jnp.float32)
    err_f32 = np.max(np.abs(np.asarray(out_f32) - ref)) / scale
    assert err_f32 < 2e-2, f"f32 path relative error too large: {err_f32}"

    # bf16 MXU path (default).
    out_bf16 = run(params_nz)
    err_bf16 = np.max(np.abs(np.asarray(out_bf16) - ref)) / scale
    assert err_bf16 < 5e-2, f"bf16 path relative error too large: {err_bf16}"

    print("KERNEL_OK")
</pallas_src>

<mosaic_0001>
module attributes {stable_mosaic.version = 11 : i64} {
  func.func @pam_kernel(%arg0: i32, %arg1: i32, %arg2: i32, %arg3: memref<1x128x4xbf16, #tpu.memory_space<vmem>>, %arg4: memref<1x4x128xbf16, #tpu.memory_space<vmem>>, %arg5: memref<1x32x128xbf16, #tpu.memory_space<vmem>>, %arg6: memref<1x32x128xf32, #tpu.memory_space<vmem>>, %arg7: memref<1x1xf32, #tpu.memory_space<smem>>, %arg8: memref<1x32x128xf32, #tpu.memory_space<vmem>>, %arg9: memref<32x128xf32, #tpu.memory_space<vmem>>) attributes {dimension_semantics = [#tpu.dimension_semantics<parallel>, #tpu.dimension_semantics<parallel>, #tpu.dimension_semantics<arbitrary>], iteration_bounds = array<i64: 2, 2, 2>, scalar_prefetch = 0 : i64, scratch_operands = 1 : i64, tpu.core_type = #tpu.core_type<tc>, window_params = [{transform_indices = @transform_0, window_bounds = array<i64: 1, 128, 4>}, {transform_indices = @transform_1, window_bounds = array<i64: 1, 4, 128>}, {transform_indices = @transform_2, window_bounds = array<i64: 1, 32, 128>}, {transform_indices = @transform_3, window_bounds = array<i64: 1, 32, 128>}, {transform_indices = @transform_4, window_bounds = array<i64: 1, 1>}, {transform_indices = @transform_5, window_bounds = array<i64: 1, 32, 128>}]} {
    %c0_i32 = arith.constant 0 : i32
    %0 = arith.cmpi eq, %arg2, %c0_i32 : i32
    %1 = arith.extui %0 : i1 to i32
    %c0_i32_0 = arith.constant 0 : i32
    %2 = arith.cmpi ne, %1, %c0_i32_0 : i32
    scf.if %2 {
      %cst_15 = arith.constant 0.000000e+00 : f32
      %19 = vector.broadcast %cst_15 : f32 to vector<32x128xf32>
      %c0_16 = arith.constant 0 : index
      %c0_17 = arith.constant 0 : index
      %20 = vector.load %arg9[%c0_16, %c0_17] : memref<32x128xf32, #tpu.memory_space<vmem>>, vector<32x128xf32>
      tpu.vector_store %arg9[%c0_16, %c0_17], %19 {strides = array<i32>} : memref<32x128xf32, #tpu.memory_space<vmem>>, vector<32x128xf32>,
    } else {
    }
    %c0 = arith.constant 0 : index
    %c0_1 = arith.constant 0 : index
    %c0_2 = arith.constant 0 : index
    %3 = vector.load %arg3[%c0, %c0_1, %c0_2] : memref<1x128x4xbf16, #tpu.memory_space<vmem>>, vector<1x128x4xbf16>
    %4 = vector.shape_cast %3 : vector<1x128x4xbf16> to vector<128x4xbf16>
    %c0_3 = arith.constant 0 : index
    %c0_4 = arith.constant 0 : index
    %c0_5 = arith.constant 0 : index
    %5 = vector.load %arg4[%c0_3, %c0_4, %c0_5] : memref<1x4x128xbf16, #tpu.memory_space<vmem>>, vector<1x4x128xbf16>
    %6 = vector.shape_cast %5 : vector<1x4x128xbf16> to vector<4x128xbf16>
    %cst = arith.constant dense<0.000000e+00> : vector<128x128xf32>
    %7 = tpu.matmul %4, %6, %cst {dimension_numbers = #tpu.dot_dimension_numbers<[1], [0], [0], [1], [0, 0, 1, 1], [], []>} : vector<128x4xbf16>, vector<4x128xbf16>, vector<128x128xf32> -> vector<128x128xf32>
    %8 = math.tanh %7 : vector<128x128xf32>
    %c0_6 = arith.constant 0 : index
    %c0_7 = arith.constant 0 : index
    %9 = vector.load %arg9[%c0_6, %c0_7] : memref<32x128xf32, #tpu.memory_space<vmem>>, vector<32x128xf32>
    %c0_8 = arith.constant 0 : index
    %c0_9 = arith.constant 0 : index
    %c0_10 = arith.constant 0 : index
    %10 = vector.load %arg5[%c0_8, %c0_9, %c0_10] : memref<1x32x128xbf16, #tpu.memory_space<vmem>>, vector<1x32x128xbf16>
    %11 = vector.shape_cast %10 : vector<1x32x128xbf16> to vector<32x128xbf16>
    %12 = arith.truncf %8 : vector<128x128xf32> to vector<128x128xbf16>
    %cst_11 = arith.constant dense<0.000000e+00> : vector<32x128xf32>
    %13 = tpu.matmul %11, %12, %cst_11 {dimension_numbers = #tpu.dot_dimension_numbers<[1], [1], [0], [0], [0, 0, 1, 0], [], []>} : vector<32x128xbf16>, vector<128x128xbf16>, vector<32x128xf32> -> vector<32x128xf32>
    %14 = arith.addf %9, %13 : vector<32x128xf32>
    %c0_12 = arith.constant 0 : index
    %c0_13 = arith.constant 0 : index
    %15 = vector.load %arg9[%c0_12, %c0_13] : memref<32x128xf32, #tpu.memory_space<vmem>>, vector<32x128xf32>
    tpu.vector_store %arg9[%c0_12, %c0_13], %14 {strides = array<i32>} : memref<32x128xf32, #tpu.memory_space<vmem>>, vector<32x128xf32>,
    %c1_i32 = arith.constant 1 : i32
    %16 = arith.cmpi eq, %arg2, %c1_i32 : i32
    %17 = arith.extui %16 : i1 to i32
    %c0_i32_14 = arith.constant 0 : i32
    %18 = arith.cmpi ne, %17, %c0_i32_14 : i32
    scf.if %18 {
      %c0_15 = arith.constant 0 : index
      %c0_16 = arith.constant 0 : index
      %19 = memref.load %arg7[%c0_15, %c0_16] : memref<1x1xf32, #tpu.memory_space<smem>>
      %c0_17 = arith.constant 0 : index
      %c0_18 = arith.constant 0 : index
      %20 = vector.load %arg9[%c0_17, %c0_18] : memref<32x128xf32, #tpu.memory_space<vmem>>, vector<32x128xf32>
      %21 = vector.broadcast %19 : f32 to vector<32x128xf32>
      %22 = arith.mulf %21, %20 : vector<32x128xf32>
      %c0_19 = arith.constant 0 : index
      %c0_20 = arith.constant 0 : index
      %c0_21 = arith.constant 0 : index
      %23 = vector.load %arg6[%c0_19, %c0_20, %c0_21] : memref<1x32x128xf32, #tpu.memory_space<vmem>>, vector<1x32x128xf32>
      %24 = vector.shape_cast %23 : vector<1x32x128xf32> to vector<32x128xf32>
      %25 = arith.addf %22, %24 : vector<32x128xf32>
      %c0_22 = arith.constant 0 : index
      %c0_23 = arith.constant 0 : index
      %c0_24 = arith.constant 0 : index
      %26 = vector.load %arg8[%c0_22, %c0_23, %c0_24] : memref<1x32x128xf32, #tpu.memory_space<vmem>>, vector<1x32x128xf32>
      %27 = vector.shape_cast %26 : vector<1x32x128xf32> to vector<32x128xf32>
      %28 = vector.shape_cast %25 : vector<32x128xf32> to vector<1x32x128xf32>
      tpu.vector_store %arg8[%c0_22, %c0_23, %c0_24], %28 {strides = array<i32>} : memref<1x32x128xf32, #tpu.memory_space<vmem>>, vector<1x32x128xf32>,
    } else {
    }
    return
  }
  func.func @transform_0(%arg0: i32, %arg1: i32, %arg2: i32) -> (i32, i32, i32) {
    %c0_i32 = arith.constant 0 : i32
    %c0_i32_0 = arith.constant 0 : i32
    return %arg0, %arg1, %c0_i32 : i32, i32, i32
  }
  func.func @transform_1(%arg0: i32, %arg1: i32, %arg2: i32) -> (i32, i32, i32) {
    %c0_i32 = arith.constant 0 : i32
    %c0_i32_0 = arith.constant 0 : i32
    return %arg0, %c0_i32, %arg2 : i32, i32, i32
  }
  func.func @transform_2(%arg0: i32, %arg1: i32, %arg2: i32) -> (i32, i32, i32) {
    %c0_i32 = arith.constant 0 : i32
    %c0_i32_0 = arith.constant 0 : i32
    return %arg0, %c0_i32, %arg2 : i32, i32, i32
  }
  func.func @transform_3(%arg0: i32, %arg1: i32, %arg2: i32) -> (i32, i32, i32) {
    %c0_i32 = arith.constant 0 : i32
    %c0_i32_0 = arith.constant 0 : i32
    return %arg0, %c0_i32, %arg1 : i32, i32, i32
  }
  func.func @transform_4(%arg0: i32, %arg1: i32, %arg2: i32) -> (i32, i32) {
    %c0_i32 = arith.constant 0 : i32
    %c0_i32_0 = arith.constant 0 : i32
    %c0_i32_1 = arith.constant 0 : i32
    return %c0_i32, %c0_i32_0 : i32, i32
  }
  func.func @transform_5(%arg0: i32, %arg1: i32, %arg2: i32) -> (i32, i32, i32) {
    %c0_i32 = arith.constant 0 : i32
    %c0_i32_0 = arith.constant 0 : i32
    return %arg0, %c0_i32, %arg1 : i32, i32, i32
  }
}

</mosaic_0001>

<bundles_post_ra>
// kernel: tpu_custom_call.1
= control target key start
LH: loop header
LB: loop body
LE: loop exit
PB: predicated region body
PF: predicated region fallthrough
CT: control target
= control target key end

     0   :  { %s1594_s0 = inlined_call_operand.vmem [shape: bf16[2,256,4], index: 0, kind: input, shape index: {}]   ;;  %s1595_s1 = inlined_call_operand.vmem [shape: bf16[2,4,256], index: 1, kind: input, shape index: {}]   ;;  %s1596_s2 = inlined_call_operand.vmem [shape: bf16[2,32,256], index: 2, kind: input, shape index: {}]   ;;  %s1597_s3 = inlined_call_operand.vmem [shape: f32[2,32,256], index: 3, kind: input, shape index: {}]   ;;  %s1598_s4 = inlined_call_operand.<no memory space> [shape: f32[1,1], index: 4, kind: input, shape index: {}]   ;;  %s1599_s5 = inlined_call_operand.hbm [shape: f32[2,32,256], index: 5, kind: output, shape index: {}]  }
   0x1   :  { %1610 = sst [smem:[#allocation19_spill]] %s1596_s2 }
   0x2   :  { %1611 = sst [smem:[#allocation20_spill]] %s1597_s3 }
   0x3   :  { %10 = sst [smem:[#allocation3]] %s1598_s4 }
   0x4   :  { %11 = vsyncpa [#allocation7], 0 }
   0x5   :  { %13 = vsyncpa [#allocation7 + $0x1], 0  ;;  %s1335_s20 = smov 0   ;;  %s1337_s21 = smov 0  }
   0x6   :  { %s1339_s22 = smov 0   ;;  %s1341_s23 = smov 0  }
   0x7   :  { %s1343_s24 = smov 0   ;;  %s1345_s25 = smov 0  }
   0x8   :  { %s1347_s26 = smov 0   ;;  %s1349_s27 = smov 0  }
   0x9   :  { %s1351_s28 = smov 0   ;;  %s1353_s4 = smov 0  }
   0xa   :  { %s1355_s29 = smov 0   ;;  %s1357_s30 = smov 0  }
   0xb LB: > { %1612 = sst [smem:[#allocation9_spill]] %s1251_s20  ;;  %s918_s6 = sadd.s32 4294967295, %s1295_s30   ;;  %s1295_s30 = sphi %s1357_s30, %s19_s30   ;;  %s1291_s29 = sphi %s1355_s29, %s1638_s29   ;;  %s1287_s4 = sphi %s1353_s4, %s1637_s4   ;;  %s1283_s28 = sphi %s1351_s28, %s1636_s28   ;;  %s1279_s27 = sphi %s1349_s27, %s1635_s27   ;;  %s1275_s26 = sphi %s1347_s26, %s1634_s26   ;;  %s1271_s25 = sphi %s1345_s25, %s1633_s25   ;;  %s1267_s24 = sphi %s1343_s24, %s1632_s24   ;;  %s1263_s23 = sphi %s1341_s23, %s1631_s23   ;;  %s1259_s22 = sphi %s1339_s22, %s1641_s22   ;;  %s1255_s21 = sphi %s1337_s21, %s1640_s21   ;;  %s1251_s20 = sphi %s1335_s20, %s1639_s20  }
   0xc   : > { %1613 = sst [smem:[#allocation10_spill]] %s1267_s24  ;;  %s919_s7 = sadd.s32 4294967294, %s1295_s30  }
   0xd   : > { %1614 = sst [smem:[#allocation11_spill]] %s1283_s28  ;;  %s31_s8 = sadd.s32 1, %s1283_s28 }
   0xe   : > { %1615 = sst [smem:[#allocation12_spill]] %s1287_s4  ;;  %p32_p0 = scmp.ge.s32.totalorder %s31_s8, 2 }
   0xf   : > { %1616 = sst [smem:[#allocation13_spill]] %s1291_s29  ;;  %s34_s9 = sadd.s32 1, %s1287_s4 }
  0x10   : > { %s38_s10 = sadd.s32 1, %s1291_s29  ;;  %p110_p1 = scmp.ne.s32.totalorder %s1267_s24, %s1263_s23 }
  0x11   : > { %s1643_s8 = smov (%p32_p0, %s31_s8), 0  ;;  %s1645_s9 = smov (!%p32_p0, %s34_s9), %s1287_s4 }
  0x12   : > { %1617 = sst [smem:[#allocation14_spill]] %s1643_s8  ;;  %s103_s11 = sadd.s32 1, %s1267_s24 }
  0x13   : > { %p111_p2 = scmp.eq.s32.totalorder %s1295_s30, 0  ;;  %p36_p3 = scmp.ge.s32.totalorder %s1645_s9, 2 }
  0x14   : > { %s99_s12 = ssub.s32 %s1283_s28, %s1643_s8  ;;  %p138_p5 = scmp.ne.s32.totalorder %s1259_s22, %s1255_s21 }
  0x15   : > { %p1409_p4 = por %p111_p2, %p110_p1  ;;  %s1647_s9 = smov (%p36_p3, %s1645_s9), 0 }
  0x16   : > { %1619 = sst [smem:[#allocation15_spill]] %s1647_s9  ;;  %s1649_s10 = smov (!%p36_p3, %s38_s10), %s1291_s29 }
  0x17   : > { %s127_s14 = ssub.s32 %s1287_s4, %s1647_s9  ;;  %p1420_p6 = por %p138_p5, %p111_p2 }
  0x18   : > { %p40_p7 = scmp.ge.s32.totalorder %s1649_s10, 2  ;;  %p191_p8 = scmp.eq.s32.totalorder %s918_s6, 7 }
  0x19   : > { %p196_p9 = scmp.ne.s32.totalorder %s1255_s21, %s1251_s20  ;;  %p197_p10 = scmp.eq.s32.totalorder %s919_s7, 7 }
  0x1a   : > { %s1651_s10 = smov (%p40_p7, %s1649_s10), 0  ;;  %p1428_p11 = por %p191_p8, %p138_p5 }
  0x1b   : > { %1621 = sst [smem:[#allocation16_spill]] %s1651_s10  ;;  %p1432_p12 = por %p197_p10, %p196_p9 }
  0x1c   : > { %s98_s18 = ssub.s32 %s1291_s29, %s1651_s10  ;;  %s131_s19 = sadd.s32 1, %s1259_s22 }
  0x1d   : > { %s1623_s17 = scalar_select %p1432_p12, 1, 0 }
  0x1e   : > { %s100_s9 = sor.u32 %s99_s12, %s98_s18  ;;  %s128_s8 = sor.u32 %s127_s14, %s98_s18 }
  0x1f   : > { %1624 = sst [smem:[#allocation17_spill]] %s1623_s17  ;;  %p101_p13 = scmp.eq.s32.totalorder %s100_s9, 0 }
  0x20   : > { %p129_p0 = scmp.eq.s32.totalorder %s128_s8, 0  ;;  %p921_p1 = scmp.ge.s32.totalorder %s1295_s30, 8 }
  0x21   : > { %s1440_s6 = scalar_select %p101_p13, %s1267_s24, %s103_s11  }
  0x22   : > { %s1443_s7 = scalar_select %p129_p0, %s1259_s22, %s131_s19  }
  0x23   : > { %1625 = sst [smem:[#allocation18_spill]] %s1440_s6  ;;  %216 = sbr.rel (%p921_p1) target bundleno = 66 (0x42), region = 20 }
  0x2a   : > { %243 = sbr.rel (!%p1409_p4) target bundleno = 54 (0x36), region = 32  ;;  %s245_s17 = sand.u32 (%p1409_p4), 1, %s1267_s24  }
  0x2b   : > { %s923_s10 = sshll.u32 (%p1409_p4), %s1291_s29, 3  ;;  %s922_s20 = sshll.u32 (%p1409_p4), %s245_s17, 4 }
  0x2c   : > { %s249_s12 = sadd.s32 (%p1409_p4), %s1283_s28, %s923_s10  ;;  %s1626_s2 = sld [smem:[#allocation19_spill]] (%p1409_p4) }
  0x2d   : > { %s924_s14 = sshll.u32 (%p1409_p4), %s249_s12, 2  ;;  %s247_s18 = scalar_lea.vmem (%p1409_p4), [#allocation4], %s922_s20 }
  0x32   : > { %s251_s11 = scalar_lea.vmem %s1626_s2, %s924_s14 }
  0x33   : > { %v267_v0 = vld [vmem:[%s251_s11] sm:$0xf]  ;;  %v269_v1 = vld [vmem:[%s251_s11 + $0x8] sm:$0xf]  ;;  %v271_v2 = vld [vmem:[%s251_s11 + $0x10] sm:$0xf] }
  0x34   : > { %268 = vst [vmem:[%s247_s18] sm:$0xf] %v267_v0  ;;  %270 = vst [vmem:[%s247_s18 + $0x4] sm:$0xf] %v269_v1  ;;  %v273_v3 = vld [vmem:[%s251_s11 + $0x18] sm:$0xf] }
  0x35   : > { %272 = vst [vmem:[%s247_s18 + $0x8] sm:$0xf] %v271_v2  ;;  %274 = vst [vmem:[%s247_s18 + $0xc] sm:$0xf] %v273_v3 }
  0x36 PF: > { %305 = sbr.rel (!%p1420_p6) target bundleno = 66 (0x42), region = 73  ;;  %s307_s10 = sand.u32 (%p1420_p6), 1, %s1259_s22  }
  0x37   : > { %s926_s13 = sshll.u32 (%p1420_p6), %s1291_s29, 3  ;;  %s925_s17 = sshll.u32 (%p1420_p6), %s307_s10, 5 }
  0x38   : > { %s311_s19 = sadd.s32 (%p1420_p6), %s1287_s4, %s926_s13  ;;  %s1627_s3 = sld [smem:[#allocation20_spill]] (%p1420_p6) }
  0x39   : > { %s927_s12 = sshll.u32 (%p1420_p6), %s311_s19, 3  ;;  %s309_s8 = scalar_lea.vmem (%p1420_p6), [#allocation5], %s925_s17 }
  0x3e   : > { %s313_s20 = scalar_lea.vmem %s1627_s3, %s927_s12 }
  0x3f   : > { %v347_v4 = vld [vmem:[%s313_s20] sm:$0xff]  ;;  %v349_v5 = vld [vmem:[%s313_s20 + $0x10] sm:$0xff] }
  0x40   : > { %v351_v6 = vld [vmem:[%s313_s20 + $0x20] sm:$0xff]  ;;  %348 = vst [vmem:[%s309_s8] sm:$0xff] %v347_v4  ;;  %350 = vst [vmem:[%s309_s8 + $0x8] sm:$0xff] %v349_v5  ;;  %v353_v7 = vld [vmem:[%s313_s20 + $0x30] sm:$0xff] }
  0x41   : > { %352 = vst [vmem:[%s309_s8 + $0x10] sm:$0xff] %v351_v6  ;;  %354 = vst [vmem:[%s309_s8 + $0x18] sm:$0xff] %v353_v7 }
  0x42 PF: > { %p928_p2 = scmp.ge.s32.totalorder %s1295_s30, 1  ;;  %p359_p3 = scmp.lt.s32.totalorder %s1295_s30, 9 }
  0x44   : > { %p360_p4 = pnand %p928_p2, %p359_p3 }
  0x45   : > { %s366_s15 = sand.u32 (!%p360_p4), 1, %s1263_s23   ;;  %s1605_s11 = sand.u32 (!%p360_p4), 1, %s1255_s21  }
  0x46   : > { %363 = sbr.rel (%p360_p4) target bundleno = 643 (0x283), region = 111  ;;  %s1466_s18 = sshll.u32 (!%p360_p4), %s366_s15, 4 }
  0x47   : > { %s930_s10 = sshll.u32 (!%p360_p4), %s1605_s11, 5  ;;  %s932_s13 = sshll.u32 (!%p360_p4), %s1275_s26, 4 }
  0x48   : > { %p422_p5 = scmp.lt.s32.totalorder (!%p360_p4), %s1279_s27, 1  ;;  %p424_p6 = scmp.lt.s32.totalorder (!%p360_p4), %s932_s13, 31 }
  0x49   : > { %p433_p7 = scmp.lt.s32.totalorder (!%p360_p4), %s1271_s25, 1  ;;  %s368_s28 = scalar_lea.vmem (!%p360_p4), [#allocation4], %s1466_s18 }
  0x4a   : > { %s1484_s6 = scalar_lea.vmem (!%p360_p4), [#allocation5], %s930_s10  ;;  %s1486_s24 = scalar_lea.vmem (!%p360_p4), [#allocation6], %s930_s10 }
  0x4b   : > { %p937_p8 = scmp.ne.s32.totalorder (!%p360_p4), %s1271_s25, 0 }
  0x4d   : > { %s423_s17 = scalar_select %p422_p5, %s1279_s27, 1 }
  0x4e   : > { %s1653_s13 = smov (!%p424_p6, %s932_s13), 31  ;;  %v1297_v8 = vmov (!%p937_p8), 0.0  }
  0x4f   : > { %s933_s19 = sshll.u32 %s423_s17, 5  ;;  %s935_s23 = sshll.u32 %s423_s17, 1  ;;  %444 = vst [vmem:[#allocation2] sm:$0xff] (!%p937_p8), %v1297_v8  ;;  %445 = vst [vmem:[#allocation2 + $0x8] sm:$0xff] (!%p937_p8), %v1297_v8 }
  0x50   : > { %s427_s12 = sadd.s32 %s933_s19, %s1653_s13  ;;  %446 = vst [vmem:[#allocation2 + $0x10] sm:$0xff] (!%p937_p8), %v1297_v8  ;;  %447 = vst [vmem:[#allocation2 + $0x18] sm:$0xff] (!%p937_p8), %v1297_v8 }
  0x51   : > { %s934_s14 = sshll.u32 %s427_s12, 2  ;;  %443 = sbr.rel (%p937_p8) target bundleno = 88 (0x58), region = 123 }
  0x52   : > { %s1477_s8 = scalar_lea.vmem %s1594_s0, %s934_s14 }
  0x53   : > { %s434_s15 = scalar_select %p433_p7, %s1271_s25, 1 }
  0x55   : > { %s436_s2 = sadd.s32 %s935_s23, %s434_s15 }
  0x56   : > { %s936_s3 = sshll.u32 %s436_s2, 1 }
  0x57   : > { %s438_s4 = scalar_lea.vmem %s1595_s1, %s936_s3 }
  0x58 PF: > { %v464_v9 = vld [vmem:[%s438_s4] sm:$0x3]  ;;  %vm530_vm0 = vcmask 1041408   ;;  %vm505_vm1 = vcmask 31744   ;;  %v1128_v12 = vld [vmem:[%s1477_s8 + $0x8] sm:$0xff]   ;;  %v1129_v13 = vld [vmem:[%s1477_s8 + $0x10] sm:$0xff]  }
  0x59   : > { %v1127_v10 = vld [vmem:[%s1477_s8] sm:$0xff]   ;;  %1019 = vmatprep.subr.msk.bf16.mxu0 %vm530_vm0, %v464_v9  ;;  %v532_v11 = vsel %vm530_vm0, %v464_v9, 0  ;;  %v1130_v14 = vld [vmem:[%s1477_s8 + $0x18] sm:$0xff]   ;;  %v1132_v16 = vld [vmem:[%s1477_s8 + $0x28] sm:$0xff]   ;;  %p956_p9 = scmp.ne.s32.totalorder %s1271_s25, 1 }
  0x5a   : > { %982 = vmatpush3.bf16.msra.mxu0 %v532_v11  ;;  %983 = vmatprep.mubr.msk.bf16.mxu0 %vm505_vm1, %v1127_v10  ;;  %v1131_v15 = vld [vmem:[%s1477_s8 + $0x20] sm:$0xff]   ;;  %v1133_v17 = vld [vmem:[%s1477_s8 + $0x30] sm:$0xff]   ;;  %v1134_v18 = vld [vmem:[%s1477_s8 + $0x38] sm:$0xff]   ;;  %s736_s2 = sld [smem:[#allocation3]] (!%p956_p9) }
  0x5b   : > { %v1135_v19 = vld [vmem:[%s368_s28] sm:$0xff]   ;;  %v1136_v60 = vld [vmem:[%s368_s28 + $0x8] sm:$0xff]  }
  0x5c   : > { %1015 = vmatprep.mubr.bf16.mxu1 %v1135_v19  ;;  %v649_v61 = vld [vmem:[#allocation2 + $0x10] sm:$0xff]  ;;  %v647_v62 = vld [vmem:[#allocation2] sm:$0xff]  ;;  %v650_v0 = vld [vmem:[#allocation2 + $0x18] sm:$0xff] }
  0x5d   : > { %984 = vmatmul.mubr.msk.bf16.vlgmr.msra.gmra.mrb[0].mxu0 %vm505_vm1, %v1128_v12  ;;  %v648_v3 = vld [vmem:[#allocation2 + $0x8] sm:$0xff] }
  0x5e   : > { %987 = vmatprep.mubr.msk.bf16.mxu0 %vm505_vm1, %v1129_v13  ;;  %v746_v13 = vld [vmem:[%s1484_s6] sm:$0xff] (!%p956_p9) }
  0x65   : > { %988 = vmatmul.mubr.msk.bf16.gmra.mrb[4].mxu0 %vm505_vm1, %v1130_v14  ;;  %v741_v14 = vstv (!%p956_p9), %s736_s2 }
  0x66   : > { %991 = vmatprep.mubr.msk.bf16.mxu0 %vm505_vm1, %v1131_v15  ;;  %v747_v15 = vld [vmem:[%s1484_s6 + $0x8] sm:$0xff] (!%p956_p9) }
  0x6d   : > { %992 = vmatmul.mubr.msk.bf16.gmra.mrb[8].mxu0 %vm505_vm1, %v1132_v16  ;;  %v748_v16 = vld [vmem:[%s1484_s6 + $0x10] sm:$0xff] (!%p956_p9) }
  0x6e   : > { %995 = vmatprep.mubr.msk.bf16.mxu0 %vm505_vm1, %v1133_v17  ;;  %v749_v17 = vld [vmem:[%s1484_s6 + $0x18] sm:$0xff] (!%p956_p9) }
  0x75   : > { %996 = vmatmul.mubr.msk.bf16.gmra.mrb[12].mxu0 %vm505_vm1, %v1134_v18 }
 0x130   : > { %v985_v20 = vpop.f32.mrb[0].mxu0 }
 0x131   : > { %1137 = vtanh.f32 %v985_v20  ;;  %v568_v21 = vpop.f32.mrb[1].mxu0 }
 0x132   : > { %1139 = vtanh.f32 %v568_v21  ;;  %v986_v22 = vpop.f32.mrb[2].mxu0 }
 0x133   : > { %1141 = vtanh.f32 %v986_v22  ;;  %v571_v23 = vpop.f32.mrb[3].mxu0 }
 0x134   : > { %1143 = vtanh.f32 %v571_v23 }
 0x138   : > { %v989_v24 = vpop.f32.mrb[4].mxu0 }
 0x139   : > { %1145 = vtanh.f32 %v989_v24  ;;  %v584_v25 = vpop.f32.mrb[5].mxu0 }
 0x13a   : > { %1147 = vtanh.f32 %v584_v25  ;;  %v990_v26 = vpop.f32.mrb[6].mxu0 }
 0x13b   : > { %v1138_v27 = vpop.eup %1137  ;;  %1149 = vtanh.f32 %v990_v26  ;;  %v587_v28 = vpop.f32.mrb[7].mxu0 }
 0x13c   : > { %v1140_v29 = vpop.eup %1139  ;;  %1151 = vtanh.f32 %v587_v28 }
 0x13d   : > { %v1142_v30 = vpop.eup %1141 }
 0x13e   : > { %v1144_v31 = vpop.eup %1143  ;;  %v656_v32 = vpack.c.bf16 %v1142_v30, %v1138_v27 }
 0x13f   : > { %v655_v33 = vpack.c.bf16 %v1144_v31, %v1140_v29 }
 0x140   : > { %v993_v34 = vpop.f32.mrb[8].mxu0 }
 0x141   : > { %999 = vmatprep.subr.bf16.mxu1 %v655_v33  ;;  %1153 = vtanh.f32 %v993_v34  ;;  %v600_v35 = vpop.f32.mrb[9].mxu0 }
 0x142   : > { %1000 = vmatpush3.bf16.xpose.msra.mxu1 %v655_v33  ;;  %1155 = vtanh.f32 %v600_v35  ;;  %v994_v36 = vpop.f32.mrb[10].mxu0 }
 0x143   : > { %v1146_v37 = vpop.eup %1145  ;;  %1001 = vmatprep.subr.bf16.mxu1 %v656_v32  ;;  %1157 = vtanh.f32 %v994_v36  ;;  %v603_v38 = vpop.f32.mrb[11].mxu0 }
 0x144   : > { %v1148_v39 = vpop.eup %1147  ;;  %1159 = vtanh.f32 %v603_v38 }
 0x145   : > { %v1150_v40 = vpop.eup %1149 }
 0x146   : > { %v1152_v41 = vpop.eup %1151  ;;  %v658_v42 = vpack.c.bf16 %v1150_v40, %v1146_v37 }
 0x147   : > { %v657_v43 = vpack.c.bf16 %v1152_v41, %v1148_v39 }
 0x148   : > { %v997_v44 = vpop.f32.mrb[12].mxu0 }
 0x149   : > { %1161 = vtanh.f32 %v997_v44  ;;  %v616_v45 = vpop.f32.mrb[13].mxu0 }
 0x14a   : > { %1002 = vmatpush3.bf16.xpose.msra.mxu1 %v656_v32  ;;  %1163 = vtanh.f32 %v616_v45  ;;  %v998_v46 = vpop.f32.mrb[14].mxu0 }
 0x14b   : > { %v1154_v47 = vpop.eup %1153  ;;  %1003 = vmatprep.subr.bf16.mxu1 %v657_v43  ;;  %1165 = vtanh.f32 %v998_v46  ;;  %v619_v48 = vpop.f32.mrb[15].mxu0 }
 0x14c   : > { %v1156_v49 = vpop.eup %1155  ;;  %1167 = vtanh.f32 %v619_v48 }
 0x14d   : > { %v1158_v50 = vpop.eup %1157 }
 0x14e   : > { %v1160_v51 = vpop.eup %1159  ;;  %v660_v52 = vpack.c.bf16 %v1158_v50, %v1154_v47 }
 0x14f   : > { %v659_v53 = vpack.c.bf16 %v1160_v51, %v1156_v49 }
 0x152   : > { %1004 = vmatpush3.bf16.xpose.msra.mxu1 %v657_v43 }
 0x153   : > { %v1162_v54 = vpop.eup %1161  ;;  %1005 = vmatprep.subr.bf16.mxu1 %v658_v42 }
 0x154   : > { %v1164_v55 = vpop.eup %1163 }
 0x155   : > { %v1166_v56 = vpop.eup %1165 }
 0x156   : > { %v1168_v57 = vpop.eup %1167  ;;  %v662_v58 = vpack.c.bf16 %v1166_v56, %v1162_v54 }
 0x157   : > { %v661_v59 = vpack.c.bf16 %v1168_v57, %v1164_v55 }
 0x15a   : > { %1006 = vmatpush3.bf16.xpose.msra.mxu1 %v658_v42 }
 0x15b   : > { %1007 = vmatprep.subr.bf16.mxu1 %v659_v53 }
 0x162   : > { %1008 = vmatpush3.bf16.xpose.msra.mxu1 %v659_v53 }
 0x163   : > { %1009 = vmatprep.subr.bf16.mxu1 %v660_v52 }
 0x16a   : > { %1010 = vmatpush3.bf16.xpose.msra.mxu1 %v660_v52 }
 0x16b   : > { %1011 = vmatprep.subr.bf16.mxu1 %v661_v59 }
 0x172   : > { %1012 = vmatpush3.bf16.xpose.msra.mxu1 %v661_v59 }
 0x173   : > { %1013 = vmatprep.subr.bf16.mxu1 %v662_v58 }
 0x17a   : > { %1014 = vmatpush3.bf16.xpose.msra.mxu1 %v662_v58 }
 0x181   : > { %1016 = vmatmul.mubr.bf16.vlgmr.msra.gmra.mrb[0].mxu1 %v1136_v60 }
 0x254   : > { %v1017_v63 = vpop.f32.mrb[0].mxu1  ;;  %735 = sbr.rel (%p956_p9) target bundleno = 615 (0x267), region = 127 }
 0x255   : > { %v726_v1 = vadd.f32 %v1017_v63, %v649_v61  ;;  %v709_v2 = vpop.f32.mrb[1].mxu1 }
 0x256   : > { %v724_v4 = vadd.f32 %v709_v2, %v647_v62  ;;  %v1018_v5 = vpop.f32.mrb[2].mxu1 }
 0x257   : > { %730 = vst [vmem:[#allocation2 + $0x10] sm:$0xff] %v726_v1  ;;  %v727_v6 = vadd.f32 %v1018_v5, %v650_v0  ;;  %v712_v7 = vpop.f32.mrb[3].mxu1 }
 0x258   : > { %728 = vst [vmem:[#allocation2] sm:$0xff] %v724_v4  ;;  %v725_v8 = vadd.f32 %v712_v7, %v648_v3 }
 0x259   : > { %731 = vst [vmem:[#allocation2 + $0x18] sm:$0xff] %v727_v6 }
 0x25a   : > { %729 = vst [vmem:[#allocation2 + $0x8] sm:$0xff] %v725_v8 }
 0x25e   : > { %v739_v11 = vld [vmem:[#allocation2 + $0x10] sm:$0xff] }
 0x25f   : > { %v737_v9 = vld [vmem:[#allocation2] sm:$0xff]  ;;  %v744_v20 = vmul.f32 %v741_v14, %v739_v11 }
 0x260   : > { %v740_v12 = vld [vmem:[#allocation2 + $0x18] sm:$0xff]  ;;  %v742_v18 = vmul.f32 %v741_v14, %v737_v9 }
 0x261   : > { %v738_v10 = vld [vmem:[#allocation2 + $0x8] sm:$0xff]  ;;  %v745_v21 = vmul.f32 %v741_v14, %v740_v12  ;;  %v752_v24 = vadd.f32 %v748_v16, %v744_v20 }
 0x262   : > { %v743_v19 = vmul.f32 %v741_v14, %v738_v10  ;;  %v750_v22 = vadd.f32 %v746_v13, %v742_v18 }
 0x263   : > { %v753_v25 = vadd.f32 %v749_v17, %v745_v21  ;;  %756 = vst [vmem:[%s1486_s24 + $0x10] sm:$0xff] %v752_v24 }
 0x264   : > { %v751_v23 = vadd.f32 %v747_v15, %v743_v19  ;;  %754 = vst [vmem:[%s1486_s24] sm:$0xff] %v750_v22 }
 0x265   : > { %757 = vst [vmem:[%s1486_s24 + $0x18] sm:$0xff] %v753_v25 }
 0x266   : > { %755 = vst [vmem:[%s1486_s24 + $0x8] sm:$0xff] %v751_v23 }
 0x267 PF: > { %s958_s3 = sshll.u32 %s1279_s27, 3  ;;  %s773_s28 = sshll.u32 %s1486_s24, 4  ;;  %s1521_s28 = int_to_ptr.vmem [resolvable:$true] %s773_s28 }
 0x268   : > { %s770_s25 = sadd.s32 %s1275_s26, %s958_s3  ;;  %s1628_s18 = sand.u32 1, %s1255_s21  }
 0x269   : > { %s959_s4 = sshll.u32 %s770_s25, 7  ;;  %s1530_s10 = scalar_lea.sflag [#allocation7], %s1628_s18 }
 0x26a   : > { %s1526_s11 = scalar_lea.hbm %s1599_s5, %s959_s4  ;;  %s1169_s13 = scalar_lea.vmem %s1521_s28, 512 }
 0x26b   : > { %p1170_p10 = scmp.ne.s32.totalorder %s1521_s28, %s1169_s13  ;;  %s1298_s24 = smov [#allocation6]  }
 0x26c   : > { %s1173_s26 = sshll.u32 %s1298_s24, 4  ;;  %s1174_s26 = int_to_ptr.vmem [resolvable:$false] %s1173_s26 }
 0x26d   : > { %p1171_p13 = pnand %p1170_p10, %p1428_p11  ;;  %s1175_s27 = scalar_lea.vmem %s1174_s26, 1024 }
 0x26e   : > { %p1176_p1 = scmp.lt.s32.totalorder %s1521_s28, %s1174_s26  ;;  %p1177_p2 = scmp.lt.s32.totalorder %s1175_s27, %s1169_s13 }
 0x26f   : > { %p1172_p0 = pneg %p1171_p13 }
 0x270   : > { %p1178_p3 = por %p1177_p2, %p1176_p1 }
 0x272   : > { %p1179_p4 = pnand %p1178_p3, %p1172_p0 }
 0x274   : > { %1182 = shalt.err (!%p1179_p4)
}
 0x275   : > { %s1183_s17 = scalar_lea.hbm %s1526_s11, 512  ;;  %s1187_s14 = scalar_lea.hbm %s1599_s5, 2048 }
 0x276   : > { %p1184_p5 = scmp.ne.s32.totalorder %s1526_s11, %s1183_s17  ;;  %p1188_p8 = scmp.lt.u32.totalorder %s1526_s11, %s1599_s5 }
 0x277   : > { %p1189_p9 = scmp.lt.u32.totalorder %s1187_s14, %s1183_s17  ;;  %p1191_p13 = scmp.lt.u32.totalorder %s1183_s17, %s1526_s11 }
 0x278   : > { %p1185_p6 = pnand %p1184_p5, %p1428_p11 }
 0x279   : > { %p1190_p10 = por %p1189_p9, %p1188_p8 }
 0x27a   : > { %p1186_p7 = pneg %p1185_p6 }
 0x27b   : > { %p1192_p0 = por %p1191_p13, %p1190_p10 }
 0x27d   : > { %p1193_p1 = pnand %p1192_p0, %p1186_p7 }
 0x27f   : > { %1196 = shalt.err (!%p1193_p1)
}
 0x280   : > { %s1299_s8 = smov 128   ;;  %s1300_s23 = smov 256  }
 0x281   : > { %s1301_s15 = smov 8  }
 0x282   : > { %1020 = dma.vmem_to_hbm [thread:$0]  (%p1428_p11), %s1521_s28, 512, %s1526_s11, %s1530_s10, %s1299_s8, %s1300_s23, %s1301_s15  }
 0x283 PF: > { %s1629_s2 = sld [smem:[#allocation9_spill]]  ;;  %p1026_p2 = scmp.ge.s32.totalorder %s1295_s30, 2 }
 0x285   : > { %p1023_p3 = pnand %p1026_p2, %p1432_p12 }
 0x289   : > { %s788_s25 = sand.u32 1, %s1629_s2  }
 0x28a   : > { %s789_s4 = scalar_lea.sflag [#allocation7], %s788_s25 }
 0x28b   : > { %1246 = dma.done.wait (!%p1023_p3), %s789_s4, 512  }
 0x28c   : > { %1248 = vsyncadd (!%p1023_p3), %s789_s4, 4294966784  ;;  %s19_s30 = sadd.s32 1, %s1295_s30   ;;  %s1631_s23 = sld [smem:[#allocation10_spill]] }
 0x28d   : > { %p16_p4 = scmp.ge.s32.totalorder %s19_s30, 10   ;;  %s1632_s24 = sld [smem:[#allocation18_spill]] }
 0x28e   : > { %s1633_s25 = sld [smem:[#allocation11_spill]]  ;;  %s1634_s26 = sld [smem:[#allocation12_spill]] }
 0x28f   : > { %s1635_s27 = sld [smem:[#allocation13_spill]]  ;;  %s1636_s28 = sld [smem:[#allocation14_spill]] }
 0x290   : > { %s1637_s4 = sld [smem:[#allocation15_spill]]  ;;  %s1638_s29 = sld [smem:[#allocation16_spill]] }
 0x291   : > { %s1639_s20 = smov %s1255_s21  ;;  %s1640_s21 = smov %s1259_s22 }
 0x292   : > { %s1641_s22 = smov %s1443_s7  ;;  %18 = sbr.rel (!%p16_p4) target bundleno = 11 (0xb), region = 181 }
 0x299   :  { %794 = vsyncpa [#allocation7], 1 }
 0x29a   :  { %796 = vsyncpa [#allocation7 + $0x1], 1 }

</bundles_post_ra>
